<compile_context>
chip_gen: v6e
topology: v6e:2x2x1
jax: 0.10.0
libtpu: 0.0.40
codegen_flags: <defaults>
</compile_context>

<pallas_src>
import functools

import jax
import jax.numpy as jnp
from jax.experimental import pallas as pl
from jax.experimental.pallas import tpu as pltpu

LANE = 128  # TPU lane width


def _classifier_kernel(x_ref, w1_ref, b1_ref, w2_ref, b2_ref, o_ref):
    # Cast x in-kernel (VPU work hidden under the pipeline DMA) -> bf16 MXU operand.
    x = x_ref[...].astype(w1_ref.dtype)
    # fc1: (TB, F_in) @ (F_in, H) -> f32 accumulate; bias + ReLU in f32.
    h = jnp.dot(x, w1_ref[...], preferred_element_type=jnp.float32)
    h = jnp.maximum(h + b1_ref[...], 0.0)          # (1, H) bias broadcasts over rows
    # Dropout(p=0.8): eval-mode identity.
    # fc2: (TB, H) @ (H, C_pad) -> f32 accumulate; bias in f32.
    out = jnp.dot(h.astype(w2_ref.dtype), w2_ref[...],
                  preferred_element_type=jnp.float32)
    o_ref[...] = (out + b2_ref[...]).astype(o_ref.dtype)   # lane-dense (TB, C_pad) store


def prepare_params(w1, b1, w2, b2, compute_dtype=jnp.bfloat16):
    """Pack PyTorch-layout-transposed params for the kernel.

    w1: (F_in, H)  (= fc1.weight.T)   b1: (H,)
    w2: (H, C)     (= fc2.weight.T)   b2: (C,)
    Returns (w1c, b1_2d, w2c_pad, b2_2d_pad, C) with C zero-padded to a lane multiple.
    """
    H = w1.shape[1]
    C = w2.shape[1]
    c_pad = pl.cdiv(C, LANE) * LANE
    w2p = jnp.zeros((H, c_pad), w2.dtype).at[:, :C].set(w2)
    b2p = jnp.zeros((1, c_pad), b2.dtype).at[0, :C].set(b2)
    return (w1.astype(compute_dtype),
            b1.reshape(1, H).astype(jnp.float32),
            w2p.astype(compute_dtype),
            b2p.astype(jnp.float32),
            C)


def _pick_tb(batch):
    # 256-row tiles fill the 256-wide MXU on v6e/v7x; keep the grid >= 2 steps when
    # possible so both v7x TensorCores get work under "parallel" semantics.  On v5e
    # 128 already matches the 128x128 MXU.
    if batch >= 512:
        return 256
    if batch > 128:
        return 128
    return min(128, pl.cdiv(batch, 8) * 8)   # single (possibly partial) tile


@functools.partial(jax.jit, static_argnames=("num_classes",))
def custom_classifier(x, w1c, b1_2d, w2c, b2_2d, *, num_classes):
    """Fused fc1 -> relu -> (dropout eval) -> fc2.  Returns (B, num_classes) f32."""
    B, F_in = x.shape
    H = w1c.shape[1]
    c_pad = w2c.shape[1]

    tb = _pick_tb(B)
    grid = (pl.cdiv(B, tb),)   # no host-side batch padding: partial last tile is masked

    itemsize = x.dtype.itemsize
    # Explicit VMEM budget: double-buffered x/out tiles + resident params (x2 buffers)
    # + headroom for the per-tile f32/bf16 intermediates.
    vmem_needed = (2 * tb * F_in * itemsize
                   + 2 * tb * c_pad * 4
                   + 2 * (w1c.size * 2 + w2c.size * 2
                          + (b1_2d.size + b2_2d.size) * 4)
                   + 6 * tb * H * 4)
    vmem_limit = int(min(64 * 1024 * 1024, max(16 * 1024 * 1024, 2 * vmem_needed)))

    cost = pl.CostEstimate(
        flops=2 * B * F_in * H + 2 * B * H * c_pad,
        transcendentals=0,
        bytes_accessed=(x.size * itemsize
                        + w1c.size * 2 + w2c.size * 2
                        + (b1_2d.size + b2_2d.size) * 4
                        + B * c_pad * 4),
    )

    out_padded = pl.pallas_call(
        _classifier_kernel,
        out_shape=jax.ShapeDtypeStruct((B, c_pad), jnp.float32),
        grid_spec=pltpu.PrefetchScalarGridSpec(
            num_scalar_prefetch=0,
            grid=grid,
            in_specs=[
                pl.BlockSpec((tb, F_in), lambda i: (i, 0)),    # x tile, pipelined
                pl.BlockSpec((F_in, H), lambda i: (0, 0)),     # w1 resident
                pl.BlockSpec((1, H), lambda i: (0, 0)),        # b1 resident
                pl.BlockSpec((H, c_pad), lambda i: (0, 0)),    # w2 resident
                pl.BlockSpec((1, c_pad), lambda i: (0, 0)),    # b2 resident
            ],
            out_specs=pl.BlockSpec((tb, c_pad), lambda i: (i, 0)),
        ),
        compiler_params=pltpu.CompilerParams(
            dimension_semantics=("parallel",),                 # megacore on v7x
            vmem_limit_bytes=vmem_limit,
        ),
        cost_estimate=cost,
    )(x, w1c, b1_2d, w2c, b2_2d)

    # Single small slice to drop the lane padding; batch dim is already exact.
    return out_padded[:, :num_classes]


if __name__ == "__main__":
    # Shapes consistent with the module (hidden_features=512), kept small.
    B, F_IN, HIDDEN, NUM_CLASSES = 256, 256, 512, 10

    key = jax.random.PRNGKey(0)
    kx, kw1, kb1, kw2, kb2 = jax.random.split(key, 5)

    x = jax.random.normal(kx, (B, F_IN), dtype=jnp.float32)
    # Linear weights stored transposed vs PyTorch: (in_features, out_features).
    w1 = jax.random.normal(kw1, (F_IN, HIDDEN), dtype=jnp.float32) * 0.05
    b1 = jax.random.normal(kb1, (HIDDEN,), dtype=jnp.float32) * 0.05
    w2 = jax.random.normal(kw2, (HIDDEN, NUM_CLASSES), dtype=jnp.float32) * 0.05
    b2 = jax.random.normal(kb2, (NUM_CLASSES,), dtype=jnp.float32) * 0.05

    w1c, b1_2d, w2c, b2_2d, C = prepare_params(w1, b1, w2, b2)

    out = jax.block_until_ready(
        custom_classifier(x, w1c, b1_2d, w2c, b2_2d, num_classes=C))

    # Reference (pure JAX f32, eval-mode dropout = identity).  bf16 MXU operands give
    # ~1e-2-level deviations, so tolerance is loosened accordingly.
    ref = jnp.maximum(x @ w1 + b1, 0.0) @ w2 + b2
    assert out.shape == (B, NUM_CLASSES)
    max_err = float(jnp.max(jnp.abs(out - ref)))
    assert jnp.allclose(out, ref, atol=5e-2, rtol=5e-2), max_err

    print("KERNEL_OK")
</pallas_src>

<mosaic_0001>
module attributes {stable_mosaic.version = 11 : i64} {
  func.func @_classifier_kernel(%arg0: i32, %arg1: memref<128x256xf32, #tpu.memory_space<vmem>>, %arg2: memref<256x512xbf16, #tpu.memory_space<vmem>>, %arg3: memref<1x512xf32, #tpu.memory_space<vmem>>, %arg4: memref<512x128xbf16, #tpu.memory_space<vmem>>, %arg5: memref<1x128xf32, #tpu.memory_space<vmem>>, %arg6: memref<128x128xf32, #tpu.memory_space<vmem>>) attributes {dimension_semantics = [#tpu.dimension_semantics<parallel>], iteration_bounds = array<i64: 2>, scalar_prefetch = 0 : i64, scratch_operands = 0 : i64, tpu.core_type = #tpu.core_type<tc>, window_params = [{transform_indices = @transform_0, window_bounds = array<i64: 128, 256>}, {pipeline_mode = #tpu.pipeline_mode<synchronous>, transform_indices = @transform_1, window_bounds = array<i64: 256, 512>}, {pipeline_mode = #tpu.pipeline_mode<synchronous>, transform_indices = @transform_2, window_bounds = array<i64: 1, 512>}, {pipeline_mode = #tpu.pipeline_mode<synchronous>, transform_indices = @transform_3, window_bounds = array<i64: 512, 128>}, {pipeline_mode = #tpu.pipeline_mode<synchronous>, transform_indices = @transform_4, window_bounds = array<i64: 1, 128>}, {transform_indices = @transform_5, window_bounds = array<i64: 128, 128>}]} {
    %c0 = arith.constant 0 : index
    %c0_0 = arith.constant 0 : index
    %0 = vector.load %arg1[%c0, %c0_0] : memref<128x256xf32, #tpu.memory_space<vmem>>, vector<128x256xf32>
    %1 = arith.truncf %0 : vector<128x256xf32> to vector<128x256xbf16>
    %c0_1 = arith.constant 0 : index
    %c0_2 = arith.constant 0 : index
    %2 = vector.load %arg2[%c0_1, %c0_2] : memref<256x512xbf16, #tpu.memory_space<vmem>>, vector<256x512xbf16>
    %cst = arith.constant dense<0.000000e+00> : vector<128x512xf32>
    %3 = tpu.matmul %1, %2, %cst {dimension_numbers = #tpu.dot_dimension_numbers<[1], [0], [0], [1], [0, 0, 1, 1], [], []>} : vector<128x256xbf16>, vector<256x512xbf16>, vector<128x512xf32> -> vector<128x512xf32>
    %c0_3 = arith.constant 0 : index
    %c0_4 = arith.constant 0 : index
    %4 = vector.load %arg3[%c0_3, %c0_4] : memref<1x512xf32, #tpu.memory_space<vmem>>, vector<1x512xf32>
    %5 = vector.broadcast %4 : vector<1x512xf32> to vector<128x512xf32>
    %6 = arith.addf %3, %5 : vector<128x512xf32>
    %cst_5 = arith.constant 0.000000e+00 : f32
    %7 = vector.broadcast %cst_5 : f32 to vector<128x512xf32>
    %8 = arith.maximumf %6, %7 : vector<128x512xf32>
    %9 = arith.truncf %8 : vector<128x512xf32> to vector<128x512xbf16>
    %c0_6 = arith.constant 0 : index
    %c0_7 = arith.constant 0 : index
    %10 = vector.load %arg4[%c0_6, %c0_7] : memref<512x128xbf16, #tpu.memory_space<vmem>>, vector<512x128xbf16>
    %cst_8 = arith.constant dense<0.000000e+00> : vector<128x128xf32>
    %11 = tpu.matmul %9, %10, %cst_8 {dimension_numbers = #tpu.dot_dimension_numbers<[1], [0], [0], [1], [0, 0, 1, 1], [], []>} : vector<128x512xbf16>, vector<512x128xbf16>, vector<128x128xf32> -> vector<128x128xf32>
    %c0_9 = arith.constant 0 : index
    %c0_10 = arith.constant 0 : index
    %12 = vector.load %arg5[%c0_9, %c0_10] : memref<1x128xf32, #tpu.memory_space<vmem>>, vector<1x128xf32>
    %13 = vector.broadcast %12 : vector<1x128xf32> to vector<128x128xf32>
    %14 = arith.addf %11, %13 : vector<128x128xf32>
    %c0_11 = arith.constant 0 : index
    %c0_12 = arith.constant 0 : index
    %15 = vector.load %arg6[%c0_11, %c0_12] : memref<128x128xf32, #tpu.memory_space<vmem>>, vector<128x128xf32>
    tpu.vector_store %arg6[%c0_11, %c0_12], %14 {strides = array<i32>} : memref<128x128xf32, #tpu.memory_space<vmem>>, vector<128x128xf32>,
    return
  }
  func.func @transform_0(%arg0: i32) -> (i32, i32) {
    %c0_i32 = arith.constant 0 : i32
    %c0_i32_0 = arith.constant 0 : i32
    return %arg0, %c0_i32 : i32, i32
  }
  func.func @transform_1(%arg0: i32) -> (i32, i32) {
    %c0_i32 = arith.constant 0 : i32
    %c0_i32_0 = arith.constant 0 : i32
    %c0_i32_1 = arith.constant 0 : i32
    return %c0_i32, %c0_i32_0 : i32, i32
  }
  func.func @transform_2(%arg0: i32) -> (i32, i32) {
    %c0_i32 = arith.constant 0 : i32
    %c0_i32_0 = arith.constant 0 : i32
    %c0_i32_1 = arith.constant 0 : i32
    return %c0_i32, %c0_i32_0 : i32, i32
  }
  func.func @transform_3(%arg0: i32) -> (i32, i32) {
    %c0_i32 = arith.constant 0 : i32
    %c0_i32_0 = arith.constant 0 : i32
    %c0_i32_1 = arith.constant 0 : i32
    return %c0_i32, %c0_i32_0 : i32, i32
  }
  func.func @transform_4(%arg0: i32) -> (i32, i32) {
    %c0_i32 = arith.constant 0 : i32
    %c0_i32_0 = arith.constant 0 : i32
    %c0_i32_1 = arith.constant 0 : i32
    return %c0_i32, %c0_i32_0 : i32, i32
  }
  func.func @transform_5(%arg0: i32) -> (i32, i32) {
    %c0_i32 = arith.constant 0 : i32
    %c0_i32_0 = arith.constant 0 : i32
    return %arg0, %c0_i32 : i32, i32
  }
}

</mosaic_0001>

<bundles_post_ra>
// kernel: custom_classifier.1
= control target key start
LH: loop header
LB: loop body
LE: loop exit
PB: predicated region body
PF: predicated region fallthrough
CT: control target
= control target key end

     0   :  { %10 = vsyncpa [#allocation3], 0  ;;  %s2576_s0 = inlined_call_operand.hbm [shape: f32[256,256], index: 0, kind: input, shape index: {}]   ;;  %s2577_s1 = inlined_call_operand.hbm [shape: bf16[256,512], index: 1, kind: input, shape index: {}]   ;;  %s2578_s2 = inlined_call_operand.hbm [shape: f32[1,512], index: 2, kind: input, shape index: {}]   ;;  %s2579_s3 = inlined_call_operand.hbm [shape: bf16[512,128], index: 3, kind: input, shape index: {}]   ;;  %s2580_s4 = inlined_call_operand.vmem [shape: f32[1,128], index: 4, kind: input, shape index: {}]   ;;  %s2581_s5 = inlined_call_operand.vmem [shape: f32[256,128], index: 5, kind: output, shape index: {}]  }
   0x1   :  { %12 = vsyncpa [#allocation3 + $0x1], 0 }
   0x2   :  { %13 = vsyncpa [#allocation5], 0 }
   0x3   :  { %14 = vsyncpa [#allocation8], 0  ;;  %s2273_s18 = smov 0   ;;  %s2275_s19 = smov 0  }
   0x4   :  { %s2277_s20 = smov 0   ;;  %s2279_s21 = smov 0  }
   0x5 LB: > { %s1636_s22 = sadd.s32 4294967295, %s2233_s21   ;;  %p40_p0 = scmp.ne.s32.totalorder %s2225_s19, %s2221_s18  ;;  %s2233_s21 = sphi %s2279_s21, %s2597_s21   ;;  %s2229_s20 = sphi %s2277_s20, %s2596_s20   ;;  %s2225_s19 = sphi %s2275_s19, %s2595_s19   ;;  %s2221_s18 = sphi %s2273_s18, %s2594_s18  }
   0x6   : > { %p2295_p1 = scmp.eq.s32.totalorder %s1636_s22, 0  ;;  %p1638_p2 = scmp.ge.s32.totalorder %s2233_s21, 1 }
   0x7   : > { %p161_p3 = scmp.lt.s32.totalorder %s2233_s21, 3  ;;  %s2235_s26 = smov [#allocation4]  }
   0x8   : > { %s2586_s23 = scalar_select %p2295_p1, 1, 0 }
   0x9   : > { %p2303_p4 = por %p2295_p1, %p40_p0  ;;  %p2307_p5 = pnand %p1638_p2, %p161_p3 }
   0xa   : > { %s173_s27 = sshll.u32 %s2235_s26, 4  ;;  %s2236_s29 = smov [#allocation6]   ;;  %s174_s27 = int_to_ptr.vmem [resolvable:$true] %s173_s27 }
   0xb   : > { %s2587_s24 = scalar_select %p2303_p4, 1, 0 }
   0xc   : > { %s2588_s25 = scalar_select %p2307_p5, 1, 0 }
   0xd   : > { %p1897_p6 = pneg %p2307_p5  ;;  %s187_s30 = sshll.u32 %s2236_s29, 4  ;;  %s188_s30 = int_to_ptr.vmem [resolvable:$true] %s187_s30 }
   0xe   : > { %s2237_s6 = smov [#allocation7]   ;;  %s2096_s8 = scalar_lea.vmem %s174_s27, 8192 }
   0xf   : > { %p2315_p7 = pnand %p1897_p6, %p2295_p1  ;;  %s197_s7 = sshll.u32 %s2237_s6, 4  ;;  %s198_s7 = int_to_ptr.vmem [resolvable:$true] %s197_s7 }
  0x10   : > { %p2097_p9 = scmp.ne.s32.totalorder %s174_s27, %s2096_s8  ;;  %p2104_p12 = scmp.lt.s32.totalorder %s174_s27, %s174_s27 }
  0x11   : > { %p2087_p8 = pneg %p2315_p7  ;;  %p2105_p13 = scmp.lt.s32.totalorder %s2096_s8, %s2096_s8 }
  0x13   : > { %p2099_p10 = pnand %p2097_p9, %p2087_p8  ;;  %p2106_p0 = por %p2105_p13, %p2104_p12 }
  0x15   : > { %p2100_p11 = pneg %p2099_p10 }
  0x17   : > { %p2107_p2 = pnand %p2106_p0, %p2100_p11 }
  0x19   : > { %2110 = shalt.err (!%p2107_p2)
}
  0x1a   : > { %s2238_s9 = smov 256   ;;  %s2239_s10 = smov 16  }
  0x1b   : > { %1900 = dma.hbm_to_vmem [thread:$0]  (!%p2315_p7), %s2577_s1, 8192, %s174_s27, [#allocation5], %s2238_s9, %s2238_s9, %s2239_s10  }
  0x1c   : > { %s2122_s13 = scalar_lea.vmem %s188_s30, 64  ;;  %p2130_p10 = scmp.lt.s32.totalorder %s188_s30, %s188_s30 }
  0x1d   : > { %p2123_p3 = scmp.ne.s32.totalorder %s188_s30, %s2122_s13  ;;  %p2131_p11 = scmp.lt.s32.totalorder %s2122_s13, %s2122_s13 }
  0x1f   : > { %p2125_p6 = pnand %p2123_p3, %p2087_p8  ;;  %p2132_p12 = por %p2131_p11, %p2130_p10 }
  0x21   : > { %p2126_p9 = pneg %p2125_p6 }
  0x23   : > { %p2133_p13 = pnand %p2132_p12, %p2126_p9 }
  0x25   : > { %2136 = shalt.err (!%p2133_p13)
}
  0x26   : > { %1903 = dma.hbm_to_vmem [thread:$0]  (!%p2315_p7), %s2578_s2, 64, %s188_s30, [#allocation5]  }
  0x27   : > { %s2148_s16 = scalar_lea.vmem %s198_s7, 4096  ;;  %p2156_p6 = scmp.lt.s32.totalorder %s198_s7, %s198_s7 }
  0x28   : > { %p2149_p0 = scmp.ne.s32.totalorder %s198_s7, %s2148_s16  ;;  %p2157_p1 = scmp.lt.s32.totalorder %s2148_s16, %s2148_s16 }
  0x2a   : > { %p2151_p2 = pnand %p2149_p0, %p2087_p8  ;;  %p2158_p4 = por %p2157_p1, %p2156_p6 }
  0x2c   : > { %p2152_p3 = pneg %p2151_p2 }
  0x2e   : > { %p2159_p10 = pnand %p2158_p4, %p2152_p3 }
  0x30   : > { %2162 = shalt.err (!%p2159_p10)
}
  0x31   : > { %s2240_s17 = smov 64   ;;  %s2241_s18 = smov 4  }
  0x32   : > { %1906 = dma.hbm_to_vmem [thread:$0]  (!%p2315_p7), %s2579_s3, 4096, %s198_s7, [#allocation8], %s2240_s17, %s2240_s17, %s2241_s18  }
  0x33   : > { %s2349_s29 = sadd.s32 1, %s2233_s21   ;;  %s27_s6 = sadd.s32 1, %s2229_s20 }
  0x34   : > { %s24_s30 = ssub.s32 %s2233_s21, %s2349_s29  ;;  %p34_p4 = scmp.ne.s32.totalorder %s2229_s20, %s2225_s19 }
  0x35   : > { %p25_p1 = scmp.eq.s32.totalorder %s24_s30, 0  ;;  %p35_p8 = scmp.eq.s32.totalorder %s2233_s21, 0 }
  0x36   : > { %p1914_p9 = scmp.lt.s32.totalorder %s2233_s21, 2  ;;  %s214_s11 = sand.u32 1, %s2229_s20  }
  0x37   : > { %s2359_s8 = scalar_select %p25_p1, %s2229_s20, %s27_s6  }
  0x38   : > { %p36_p11 = por %p35_p8, %p34_p4  ;;  %s1643_s12 = sshll.u32 %s214_s11, 8 }
  0x39   : > { %s1754_s13 = sshll.u32 %s2233_s21, 12  ;;  %s218_s7 = scalar_lea.vmem [#allocation2], %s1643_s12 }
  0x3a   : > { %s2366_s15 = scalar_lea.hbm %s2576_s0, %s1754_s13  ;;  %s226_s16 = sshll.u32 %s218_s7, 4  ;;  %s2368_s16 = int_to_ptr.vmem [resolvable:$true] %s226_s16 }
  0x3b   : > { %p2370_p7 = pnand %p1914_p9, %p36_p11  ;;  %s2374_s18 = scalar_lea.sflag [#allocation3], %s214_s11 }
  0x3c   : > { %s2163_s26 = scalar_lea.hbm %s2366_s15, 4096  ;;  %s2168_s6 = scalar_lea.hbm %s2576_s0, 8192 }
  0x3d   : > { %p2164_p12 = scmp.ne.s32.totalorder %s2366_s15, %s2163_s26  ;;  %p2165_p13 = pneg %p2370_p7 }
  0x3e   : > { %p2169_p3 = scmp.lt.s32.totalorder %s2366_s15, %s2576_s0  ;;  %p2170_p6 = scmp.lt.s32.totalorder %s2168_s6, %s2163_s26 }
  0x3f   : > { %p2166_p0 = pnand %p2165_p13, %p2164_p12 }
  0x40   : > { %p2171_p10 = por %p2170_p6, %p2169_p3 }
  0x41   : > { %p2167_p2 = pneg %p2166_p0 }
  0x43   : > { %p2172_p1 = pnand %p2171_p10, %p2167_p2 }
  0x45   : > { %2175 = shalt.err (!%p2172_p1)
}
  0x46   : > { %s2176_s11 = scalar_lea.vmem %s2368_s16, 4096  ;;  %s2242_s28 = smov [#allocation2]  }
  0x47   : > { %p2177_p4 = scmp.ne.s32.totalorder %s2368_s16, %s2176_s11  ;;  %s2181_s14 = sshll.u32 %s2242_s28, 4  ;;  %s2182_s14 = int_to_ptr.vmem [resolvable:$false] %s2181_s14 }
  0x48   : > { %s2183_s7 = scalar_lea.vmem %s2182_s14, 8192  ;;  %p2184_p11 = scmp.lt.s32.totalorder %s2368_s16, %s2182_s14 }
  0x49   : > { %p2179_p8 = pnand %p2177_p4, %p2165_p13  ;;  %p2185_p12 = scmp.lt.s32.totalorder %s2183_s7, %s2176_s11 }
  0x4b   : > { %p2180_p9 = pneg %p2179_p8  ;;  %p2186_p0 = por %p2185_p12, %p2184_p11 }
  0x4d   : > { %p2187_p5 = pnand %p2186_p0, %p2180_p9 }
  0x4f   : > { %2190 = shalt.err (!%p2187_p5)
}
  0x50   : > { %1910 = dma.hbm_to_vmem [thread:$0]  (!%p2370_p7), %s2366_s15, 4096, %s2368_s16, %s2374_s18, %s2238_s9, %s2238_s9, %s2239_s10  }
  0x51   : > { %p2591_p13 = scmp.ne.s32.totalorder %s2588_s25, 0 }
  0x52   : > { %s240_s26 = sand.u32 (!%p2591_p13), 1, %s2225_s19   ;;  %p2592_p5 = scmp.ne.s32.totalorder (!%p2591_p13), %s2587_s24, 0 }
  0x53   : > { %238 = sbr.rel (%p2591_p13) target bundleno = 627 (0x273), region = 40  ;;  %s1648_s27 = sshll.u32 (!%p2591_p13), %s240_s26, 8 }
  0x54   : > { %s241_s30 = scalar_lea.sflag (!%p2591_p13), [#allocation3], %s240_s26  ;;  %s2401_s6 = scalar_lea.vmem (!%p2591_p13), [#allocation2], %s1648_s27 }
  0x58   : > { %2208 = dma.done.wait (%p2592_p5), %s241_s30, 4096  }
  0x59   : > { %2210 = vsyncadd (%p2592_p5), %s241_s30, 4294963200  ;;  %p2593_p2 = scmp.ne.s32.totalorder %s2586_s23, 0 }
  0x5b   : > { %2212 = dma.done.wait (%p2593_p2), [#allocation5], 8256  }
  0x5c   : > { %2214 = vsyncadd (%p2593_p2), [#allocation5], 4294959040 }
  0x5d   : > { %2216 = dma.done.wait (%p2593_p2), [#allocation8], 4096  }
  0x5e   : > { %2218 = vsyncadd (%p2593_p2), [#allocation8], 4294963200  ;;  %v1957_v0 = vld [vmem:[#allocation4 + $0xe4] ss:$16 sps:$4 sm:$0xff]   ;;  %v1959_v1 = vld [vmem:[#allocation4 + $0xec] ss:$16 sps:$4 sm:$0xff]  }
  0x5f   : > { %745 = vmatprep.subr.bf16.mxu0 %v1957_v0  ;;  %v1961_v2 = vld [vmem:[#allocation4 + $0xe0] ss:$16 sps:$4 sm:$0xff]   ;;  %v1962_v3 = vld [vmem:[#allocation4 + $0xe8] ss:$16 sps:$4 sm:$0xff]   ;;  %858 = vmatprep.subr.bf16.mxu1 %v1959_v1  ;;  %v1963_v4 = vld [vmem:[#allocation4 + $0xc4] ss:$16 sps:$4 sm:$0xff]  }
  0x60   : > { %746 = vmatpush1.bf16.msra.mxu0 %v1961_v2  ;;  %859 = vmatpush1.bf16.msra.mxu1 %v1962_v3  ;;  %v1965_v5 = vld [vmem:[#allocation4 + $0xcc] ss:$16 sps:$4 sm:$0xff]   ;;  %v1967_v6 = vld [vmem:[#allocation4 + $0xc0] ss:$16 sps:$4 sm:$0xff]   ;;  %v1968_v7 = vld [vmem:[#allocation4 + $0xc8] ss:$16 sps:$4 sm:$0xff]  }
  0x61   : > { %747 = vmatprep.subr.bf16.mxu0 %v1963_v4  ;;  %860 = vmatprep.subr.bf16.mxu1 %v1965_v5  ;;  %v1969_v8 = vld [vmem:[#allocation4 + $0xa4] ss:$16 sps:$4 sm:$0xff]   ;;  %v1971_v9 = vld [vmem:[#allocation4 + $0xac] ss:$16 sps:$4 sm:$0xff]   ;;  %v1973_v10 = vld [vmem:[#allocation4 + $0xa0] ss:$16 sps:$4 sm:$0xff]  }
  0x62   : > { %v1974_v11 = vld [vmem:[#allocation4 + $0xa8] ss:$16 sps:$4 sm:$0xff]   ;;  %v1975_v12 = vld [vmem:[#allocation4 + $0x84] ss:$16 sps:$4 sm:$0xff]   ;;  %v1977_v13 = vld [vmem:[#allocation4 + $0x8c] ss:$16 sps:$4 sm:$0xff]  }
  0x63   : > { %v1979_v14 = vld [vmem:[#allocation4 + $0x80] ss:$16 sps:$4 sm:$0xff]   ;;  %v1980_v15 = vld [vmem:[#allocation4 + $0x88] ss:$16 sps:$4 sm:$0xff]   ;;  %v1981_v16 = vld [vmem:[#allocation4 + $0x64] ss:$16 sps:$4 sm:$0xff]  }
  0x64   : > { %748 = vmatpush1.bf16.msra.mxu0 %v1967_v6  ;;  %861 = vmatpush1.bf16.msra.mxu1 %v1968_v7  ;;  %v1983_v17 = vld [vmem:[#allocation4 + $0x6c] ss:$16 sps:$4 sm:$0xff]   ;;  %v1985_v18 = vld [vmem:[#allocation4 + $0x60] ss:$16 sps:$4 sm:$0xff]   ;;  %v1986_v19 = vld [vmem:[#allocation4 + $0x68] ss:$16 sps:$4 sm:$0xff]  }
  0x65   : > { %749 = vmatprep.subr.bf16.mxu0 %v1969_v8  ;;  %862 = vmatprep.subr.bf16.mxu1 %v1971_v9  ;;  %v1987_v20 = vld [vmem:[#allocation4 + $0x44] ss:$16 sps:$4 sm:$0xff]   ;;  %v1989_v21 = vld [vmem:[#allocation4 + $0x4c] ss:$16 sps:$4 sm:$0xff]   ;;  %v1991_v22 = vld [vmem:[#allocation4 + $0x40] ss:$16 sps:$4 sm:$0xff]  }
  0x66   : > { %v1992_v23 = vld [vmem:[#allocation4 + $0x48] ss:$16 sps:$4 sm:$0xff]   ;;  %v1993_v24 = vld [vmem:[#allocation4 + $0x24] ss:$16 sps:$4 sm:$0xff]   ;;  %v1995_v25 = vld [vmem:[#allocation4 + $0x2c] ss:$16 sps:$4 sm:$0xff]  }
  0x67   : > { %v1997_v26 = vld [vmem:[#allocation4 + $0x20] ss:$16 sps:$4 sm:$0xff]   ;;  %v1998_v27 = vld [vmem:[#allocation4 + $0x28] ss:$16 sps:$4 sm:$0xff]   ;;  %v1999_v28 = vld [vmem:[#allocation4 + $0x4] ss:$16 sps:$4 sm:$0xff]  }
  0x68   : > { %750 = vmatpush1.bf16.msra.mxu0 %v1973_v10  ;;  %863 = vmatpush1.bf16.msra.mxu1 %v1974_v11  ;;  %v2001_v29 = vld [vmem:[#allocation4 + $0xc] ss:$16 sps:$4 sm:$0xff]   ;;  %v2003_v30 = vld [vmem:[#allocation4] ss:$16 sps:$4 sm:$0xff]   ;;  %v2004_v31 = vld [vmem:[#allocation4 + $0x8] ss:$16 sps:$4 sm:$0xff]  }
  0x69   : > { %751 = vmatprep.subr.bf16.mxu0 %v1975_v12  ;;  %864 = vmatprep.subr.bf16.mxu1 %v1977_v13  ;;  %v2005_v32 = vld [vmem:[#allocation4 + $0x1e4] ss:$16 sps:$4 sm:$0xff]   ;;  %v2007_v33 = vld [vmem:[#allocation4 + $0x1ec] ss:$16 sps:$4 sm:$0xff]   ;;  %v2009_v34 = vld [vmem:[#allocation4 + $0x1e0] ss:$16 sps:$4 sm:$0xff]  }
  0x6a   : > { %v2010_v35 = vld [vmem:[#allocation4 + $0x1e8] ss:$16 sps:$4 sm:$0xff]   ;;  %v2011_v36 = vld [vmem:[#allocation4 + $0x1c4] ss:$16 sps:$4 sm:$0xff]   ;;  %v2013_v37 = vld [vmem:[#allocation4 + $0x1cc] ss:$16 sps:$4 sm:$0xff]  }
  0x6b   : > { %v2015_v38 = vld [vmem:[#allocation4 + $0x1c0] ss:$16 sps:$4 sm:$0xff]   ;;  %v2016_v39 = vld [vmem:[#allocation4 + $0x1c8] ss:$16 sps:$4 sm:$0xff]   ;;  %v2017_v40 = vld [vmem:[#allocation4 + $0x1a4] ss:$16 sps:$4 sm:$0xff]  }
  0x6c   : > { %752 = vmatpush1.bf16.msra.mxu0 %v1979_v14  ;;  %865 = vmatpush1.bf16.msra.mxu1 %v1980_v15  ;;  %v2019_v41 = vld [vmem:[#allocation4 + $0x1ac] ss:$16 sps:$4 sm:$0xff]   ;;  %v2021_v42 = vld [vmem:[#allocation4 + $0x1a0] ss:$16 sps:$4 sm:$0xff]   ;;  %v2022_v43 = vld [vmem:[#allocation4 + $0x1a8] ss:$16 sps:$4 sm:$0xff]  }
  0x6d   : > { %753 = vmatprep.subr.bf16.mxu0 %v1981_v16  ;;  %866 = vmatprep.subr.bf16.mxu1 %v1983_v17  ;;  %v2023_v44 = vld [vmem:[#allocation4 + $0x184] ss:$16 sps:$4 sm:$0xff]   ;;  %v2025_v45 = vld [vmem:[#allocation4 + $0x18c] ss:$16 sps:$4 sm:$0xff]   ;;  %v2027_v48 = vld [vmem:[#allocation4 + $0x180] ss:$16 sps:$4 sm:$0xff]  }
  0x6e   : > { %v292_v46 = vld [vmem:[%s2401_s6 + $0x8] sm:$0xff]  ;;  %v294_v47 = vld [vmem:[%s2401_s6 + $0x18] sm:$0xff]  ;;  %v2029_v51 = vld [vmem:[#allocation4 + $0x164] ss:$16 sps:$4 sm:$0xff]   ;;  %s1652_s23 = sshll.u32 %s1636_s22, 4 }
  0x6f   : > { %v2028_v49 = vld [vmem:[#allocation4 + $0x188] ss:$16 sps:$4 sm:$0xff]   ;;  %v324_v50 = vpack.c.bf16 %v294_v47, %v292_v46  ;;  %v2031_v52 = vld [vmem:[#allocation4 + $0x16c] ss:$16 sps:$4 sm:$0xff]   ;;  %v2033_v53 = vld [vmem:[#allocation4 + $0x160] ss:$16 sps:$4 sm:$0xff]  }
  0x70   : > { %754 = vmatpush1.bf16.msra.mxu0 %v1985_v18  ;;  %867 = vmatpush1.bf16.msra.mxu1 %v1986_v19  ;;  %v2034_v54 = vld [vmem:[#allocation4 + $0x168] ss:$16 sps:$4 sm:$0xff]   ;;  %v2035_v55 = vld [vmem:[#allocation4 + $0x144] ss:$16 sps:$4 sm:$0xff]   ;;  %v2037_v56 = vld [vmem:[#allocation4 + $0x14c] ss:$16 sps:$4 sm:$0xff]  }
  0x71   : > { %755 = vmatprep.subr.bf16.mxu0 %v1987_v20  ;;  %868 = vmatprep.subr.bf16.mxu1 %v1989_v21  ;;  %v2039_v57 = vld [vmem:[#allocation4 + $0x140] ss:$16 sps:$4 sm:$0xff]   ;;  %v2040_v58 = vld [vmem:[#allocation4 + $0x148] ss:$16 sps:$4 sm:$0xff]   ;;  %v2041_v59 = vld [vmem:[#allocation4 + $0x124] ss:$16 sps:$4 sm:$0xff]  }
  0x72   : > { %777 = vmatprep.mubr.bf16.mxu0 %v324_v50  ;;  %890 = vmatprep.mubr.bf16.mxu1 %v324_v50  ;;  %v2043_v60 = vld [vmem:[#allocation4 + $0x12c] ss:$16 sps:$4 sm:$0xff]   ;;  %v2045_v61 = vld [vmem:[#allocation4 + $0x120] ss:$16 sps:$4 sm:$0xff]   ;;  %v2046_v62 = vld [vmem:[#allocation4 + $0x128] ss:$16 sps:$4 sm:$0xff]  }
  0x73   : > { %v2047_v63 = vld [vmem:[#allocation4 + $0x104] ss:$16 sps:$4 sm:$0xff]   ;;  %v2049_v0 = vld [vmem:[#allocation4 + $0x10c] ss:$16 sps:$4 sm:$0xff]   ;;  %v2051_v1 = vld [vmem:[#allocation4 + $0x100] ss:$16 sps:$4 sm:$0xff]  }
  0x74   : > { %756 = vmatpush1.bf16.msra.mxu0 %v1991_v22  ;;  %869 = vmatpush1.bf16.msra.mxu1 %v1992_v23  ;;  %v2052_v2 = vld [vmem:[#allocation4 + $0x108] ss:$16 sps:$4 sm:$0xff]   ;;  %v291_v3 = vld [vmem:[%s2401_s6] sm:$0xff]  ;;  %v293_v4 = vld [vmem:[%s2401_s6 + $0x10] sm:$0xff]  ;;  %p285_p7 = scmp.lt.s32.totalorder %s1652_s23, 31 }
  0x75   : > { %757 = vmatprep.subr.bf16.mxu0 %v1993_v24  ;;  %870 = vmatprep.subr.bf16.mxu1 %v1995_v25  ;;  %v296_v5 = vld [vmem:[%s2401_s6 + $0x28] sm:$0xff]  ;;  %v298_v6 = vld [vmem:[%s2401_s6 + $0x38] sm:$0xff]  ;;  %v323_v9 = vpack.c.bf16 %v293_v4, %v291_v3  ;;  %v295_v14 = vld [vmem:[%s2401_s6 + $0x20] sm:$0xff] }
  0x76   : > { %v2053_v7 = vld [vmem:[#allocation7 + $0x78] sm:$0xff]   ;;  %v326_v11 = vpack.c.bf16 %v298_v6, %v296_v5  ;;  %v2057_v13 = vld [vmem:[#allocation7 + $0x70] sm:$0xff]   ;;  %v300_v17 = vld [vmem:[%s2401_s6 + $0x48] sm:$0xff]  ;;  %s2599_s23 = smov (!%p285_p7, %s1652_s23), 31 }
  0x77   : > { %v2055_v8 = vld [vmem:[#allocation7 + $0xf8] sm:$0xff]   ;;  %v297_v15 = vld [vmem:[%s2401_s6 + $0x30] sm:$0xff]  ;;  %v320_v4 = vld [vmem:[%s2401_s6 + $0xe8] sm:$0xff]  ;;  %s1653_s9 = sshll.u32 %s2599_s23, 3 }
  0x78   : > { %758 = vmatpush1.bf16.msra.mxu0 %v1997_v26  ;;  %871 = vmatpush1.bf16.msra.mxu1 %v1998_v27  ;;  %v2054_v10 = vld [vmem:[#allocation7 + $0x38] sm:$0xff]   ;;  %v2059_v16 = vld [vmem:[#allocation7 + $0xf0] sm:$0xff]   ;;  %v2061_v21 = vld [vmem:[#allocation7 + $0x68] sm:$0xff]   ;;  %v325_v23 = vpack.c.bf16 %v297_v15, %v295_v14  ;;  %s2530_s10 = scalar_lea.vmem %s2581_s5, %s1653_s9 }
  0x79   : > { %759 = vmatprep.subr.bf16.mxu0 %v1999_v28  ;;  %872 = vmatprep.subr.bf16.mxu1 %v2001_v29  ;;  %v2056_v12 = vld [vmem:[#allocation7 + $0xb8] sm:$0xff]   ;;  %v2058_v19 = vld [vmem:[#allocation7 + $0x30] sm:$0xff]   ;;  %v2063_v22 = vld [vmem:[#allocation7 + $0xe8] sm:$0xff]  }
  0x7a   : > { %v302_v18 = vld [vmem:[%s2401_s6 + $0x58] sm:$0xff]  ;;  %v2062_v24 = vld [vmem:[#allocation7 + $0x28] sm:$0xff]   ;;  %v2065_v27 = vld [vmem:[#allocation7 + $0x60] sm:$0xff]  }
  0x7b   : > { %v2060_v20 = vld [vmem:[#allocation7 + $0xb0] sm:$0xff]   ;;  %v328_v25 = vpack.c.bf16 %v302_v18, %v300_v17  ;;  %v2064_v26 = vld [vmem:[#allocation7 + $0xa8] sm:$0xff]   ;;  %v299_v28 = vld [vmem:[%s2401_s6 + $0x40] sm:$0xff] }
  0x7c   : > { %760 = vmatpush1.bf16.msra.mxu0 %v2003_v30  ;;  %873 = vmatpush1.bf16.msra.mxu1 %v2004_v31  ;;  %v301_v29 = vld [vmem:[%s2401_s6 + $0x50] sm:$0xff]  ;;  %v2067_v30 = vld [vmem:[#allocation7 + $0xe0] sm:$0xff]   ;;  %v310_v46 = vld [vmem:[%s2401_s6 + $0x98] sm:$0xff] }
  0x7d   : > { %761 = vmatprep.subr.bf16.mxu0 %v2005_v32  ;;  %874 = vmatprep.subr.bf16.mxu1 %v2007_v33  ;;  %v304_v31 = vld [vmem:[%s2401_s6 + $0x68] sm:$0xff]  ;;  %v306_v32 = vld [vmem:[%s2401_s6 + $0x78] sm:$0xff]  ;;  %v317_v3 = vld [vmem:[%s2401_s6 + $0xd0] sm:$0xff] }
  0x7e   : > { %v2066_v33 = vld [vmem:[#allocation7 + $0x20] sm:$0xff]   ;;  %v2074_v47 = vld [vmem:[#allocation7 + $0x10] sm:$0xff]   ;;  %v2079_v50 = vld [vmem:[#allocation7 + $0xc8] sm:$0xff]  }
  0x7f   : > { %v322_v5 = vld [vmem:[%s2401_s6 + $0xf8] sm:$0xff]  ;;  %v2082_v14 = vld [vmem:[#allocation7] sm:$0xff]  }
  0x80   : > { %762 = vmatpush2.bf16.msra.mxu0 %v2009_v34  ;;  %875 = vmatpush2.bf16.msra.mxu1 %v2010_v35  ;;  %v2068_v34 = vld [vmem:[#allocation7 + $0xa0] sm:$0xff]   ;;  %v2069_v35 = vld [vmem:[#allocation7 + $0x58] sm:$0xff]  }
  0x81   : > { %763 = vmatprep.subr.bf16.mxu0 %v2011_v36  ;;  %876 = vmatprep.subr.bf16.mxu1 %v2013_v37  ;;  %v2071_v36 = vld [vmem:[#allocation7 + $0xd8] sm:$0xff]   ;;  %v327_v37 = vpack.c.bf16 %v301_v29, %v299_v28  ;;  %v2084_v15 = vld [vmem:[#allocation7 + $0x80] sm:$0xff]  }
  0x84   : > { %764 = vmatpush2.bf16.msra.mxu0 %v2015_v38  ;;  %877 = vmatpush2.bf16.msra.mxu1 %v2016_v39  ;;  %v2070_v38 = vld [vmem:[#allocation7 + $0x18] sm:$0xff]  }
  0x85   : > { %765 = vmatprep.subr.bf16.mxu0 %v2017_v40  ;;  %878 = vmatprep.subr.bf16.mxu1 %v2019_v41  ;;  %v2072_v39 = vld [vmem:[#allocation7 + $0x98] sm:$0xff]   ;;  %v330_v40 = vpack.c.bf16 %v306_v32, %v304_v31  ;;  %v2073_v41 = vld [vmem:[#allocation7 + $0x50] sm:$0xff]  }
  0x88   : > { %766 = vmatpush2.bf16.msra.mxu0 %v2021_v42  ;;  %879 = vmatpush2.bf16.msra.mxu1 %v2022_v43  ;;  %v2075_v42 = vld [vmem:[#allocation7 + $0xd0] sm:$0xff]   ;;  %v303_v43 = vld [vmem:[%s2401_s6 + $0x60] sm:$0xff] }
  0x89   : > { %767 = vmatprep.subr.bf16.mxu0 %v2023_v44  ;;  %880 = vmatprep.subr.bf16.mxu1 %v2025_v45  ;;  %v305_v44 = vld [vmem:[%s2401_s6 + $0x70] sm:$0xff]  ;;  %v308_v45 = vld [vmem:[%s2401_s6 + $0x88] sm:$0xff] }
  0x8c   : > { %768 = vmatpush2.bf16.msra.mxu0 %v2027_v48  ;;  %881 = vmatpush2.bf16.msra.mxu1 %v2028_v49  ;;  %v2076_v48 = vld [vmem:[#allocation7 + $0x90] sm:$0xff]   ;;  %v2077_v49 = vld [vmem:[#allocation7 + $0x48] sm:$0xff]  }
  0x8d   : > { %769 = vmatprep.subr.bf16.mxu0 %v2029_v51  ;;  %882 = vmatprep.subr.bf16.mxu1 %v2031_v52  ;;  %v329_v51 = vpack.c.bf16 %v305_v44, %v303_v43  ;;  %v332_v52 = vpack.c.bf16 %v310_v46, %v308_v45 }
  0x90   : > { %770 = vmatpush2.bf16.msra.mxu0 %v2033_v53  ;;  %883 = vmatpush2.bf16.msra.mxu1 %v2034_v54  ;;  %v2078_v53 = vld [vmem:[#allocation7 + $0x8] sm:$0xff]   ;;  %v307_v54 = vld [vmem:[%s2401_s6 + $0x80] sm:$0xff] }
  0x91   : > { %771 = vmatprep.subr.bf16.mxu0 %v2035_v55  ;;  %884 = vmatprep.subr.bf16.mxu1 %v2037_v56  ;;  %v309_v55 = vld [vmem:[%s2401_s6 + $0x90] sm:$0xff]  ;;  %v312_v56 = vld [vmem:[%s2401_s6 + $0xa8] sm:$0xff] }
  0x94   : > { %772 = vmatpush2.bf16.msra.mxu0 %v2039_v57  ;;  %885 = vmatpush2.bf16.msra.mxu1 %v2040_v58  ;;  %v314_v57 = vld [vmem:[%s2401_s6 + $0xb8] sm:$0xff]  ;;  %v331_v58 = vpack.c.bf16 %v309_v55, %v307_v54 }
  0x95   : > { %773 = vmatprep.subr.bf16.mxu0 %v2041_v59  ;;  %886 = vmatprep.subr.bf16.mxu1 %v2043_v60  ;;  %v334_v59 = vpack.c.bf16 %v314_v57, %v312_v56  ;;  %v311_v60 = vld [vmem:[%s2401_s6 + $0xa0] sm:$0xff] }
  0x98   : > { %774 = vmatpush2.bf16.msra.mxu0 %v2045_v61  ;;  %887 = vmatpush2.bf16.msra.mxu1 %v2046_v62  ;;  %v313_v61 = vld [vmem:[%s2401_s6 + $0xb0] sm:$0xff]  ;;  %v316_v62 = vld [vmem:[%s2401_s6 + $0xc8] sm:$0xff] }
  0x99   : > { %775 = vmatprep.subr.bf16.mxu0 %v2047_v63  ;;  %888 = vmatprep.subr.bf16.mxu1 %v2049_v0  ;;  %v318_v63 = vld [vmem:[%s2401_s6 + $0xd8] sm:$0xff]  ;;  %v333_v0 = vpack.c.bf16 %v313_v61, %v311_v60 }
  0x9c   : > { %776 = vmatpush2.bf16.msra.mxu0 %v2051_v1  ;;  %889 = vmatpush2.bf16.msra.mxu1 %v2052_v2  ;;  %v336_v1 = vpack.c.bf16 %v318_v63, %v316_v62  ;;  %v315_v2 = vld [vmem:[%s2401_s6 + $0xc0] sm:$0xff] }
  0x9d   : > { %1755 = vmatprep.subr.bf16.mxu0 %v2053_v7  ;;  %1819 = vmatprep.subr.bf16.mxu1 %v2055_v8  ;;  %v335_v6 = vpack.c.bf16 %v317_v3, %v315_v2  ;;  %v338_v7 = vpack.c.bf16 %v322_v5, %v320_v4  ;;  %v319_v8 = vld [vmem:[%s2401_s6 + $0xe0] sm:$0xff] }
  0x9f   : > { %778 = vmatmul.mubr.bf16.vlgmr.msra.gmra.mxu0 %v323_v9  ;;  %891 = vmatmul.mubr.bf16.vlgmr.msra.gmra.mxu1 %v323_v9  ;;  %v321_v9 = vld [vmem:[%s2401_s6 + $0xf0] sm:$0xff] }
  0xa0   : > { %787 = vmatprep.mubr.bf16.mxu0 %v326_v11  ;;  %900 = vmatprep.mubr.bf16.mxu1 %v326_v11  ;;  %v2080_v11 = vld [vmem:[#allocation7 + $0x88] sm:$0xff]  }
  0xa1   : > { %1756 = vmatpush3.bf16.msra.mxu0 %v2054_v10  ;;  %1820 = vmatpush3.bf16.msra.mxu1 %v2056_v12  ;;  %v337_v10 = vpack.c.bf16 %v321_v9, %v319_v8  ;;  %v2081_v12 = vld [vmem:[#allocation7 + $0x40] sm:$0xff]  }
  0xa2   : > { %1757 = vmatprep.subr.bf16.mxu0 %v2057_v13  ;;  %1821 = vmatprep.subr.bf16.mxu1 %v2059_v16  ;;  %v2083_v13 = vld [vmem:[#allocation7 + $0xc0] sm:$0xff]   ;;  %v405_v16 = vlaneseq }
  0xa4   : > { %v406_v17 = vshrl.u32 %v405_v16, 7 }
  0xa5   : > { %1758 = vmatpush3.bf16.msra.mxu0 %v2058_v19  ;;  %1822 = vmatpush3.bf16.msra.mxu1 %v2060_v20 }
  0xa6   : > { %1759 = vmatprep.subr.bf16.mxu0 %v2061_v21  ;;  %1823 = vmatprep.subr.bf16.mxu1 %v2063_v22  ;;  %v411_v18 = vsub.s32 1, %v406_v17  ;;  %v419_v19 = vsub.s32 3, %v406_v17  ;;  %v407_v20 = vsub.s32 0, %v406_v17  ;;  %v415_v21 = vsub.s32 2, %v406_v17  ;;  %v403_v22 = vld [vmem:[#allocation6] sm:$0xf] }
  0xa7   : > { %788 = vmatmul.mubr.bf16.gmra.mxu0 %v325_v23  ;;  %901 = vmatmul.mubr.bf16.gmra.mxu1 %v325_v23 }
  0xa8   : > { %797 = vmatprep.mubr.bf16.mxu0 %v328_v25  ;;  %910 = vmatprep.mubr.bf16.mxu1 %v328_v25  ;;  %v2447_v25 = vrot.slane %v403_v22, %v411_v18  ;;  %v2453_v28 = vrot.slane %v403_v22, %v415_v21 }
  0xa9   : > { %1760 = vmatpush3.bf16.msra.mxu0 %v2062_v24  ;;  %1824 = vmatpush3.bf16.msra.mxu1 %v2064_v26  ;;  %v2449_v26 = vrot.slane %v403_v22, %v419_v19 }
  0xaa   : > { %1761 = vmatprep.subr.bf16.mxu0 %v2065_v27  ;;  %1825 = vmatprep.subr.bf16.mxu1 %v2067_v30  ;;  %v2451_v27 = vrot.slane %v403_v22, %v407_v20 }
  0xad   : > { %1762 = vmatpush3.bf16.msra.mxu0 %v2066_v33  ;;  %1826 = vmatpush3.bf16.msra.mxu1 %v2068_v34 }
  0xae   : > { %1763 = vmatprep.subr.bf16.mxu0 %v2069_v35  ;;  %1827 = vmatprep.subr.bf16.mxu1 %v2071_v36 }
  0xaf   : > { %798 = vmatmul.mubr.bf16.gmra.mxu0 %v327_v37  ;;  %911 = vmatmul.mubr.bf16.gmra.mxu1 %v327_v37 }
  0xb0   : > { %807 = vmatprep.mubr.bf16.mxu0 %v330_v40  ;;  %920 = vmatprep.mubr.bf16.mxu1 %v330_v40 }
  0xb1   : > { %1764 = vmatpush3.bf16.msra.mxu0 %v2070_v38  ;;  %1828 = vmatpush3.bf16.msra.mxu1 %v2072_v39 }
  0xb2   : > { %1765 = vmatprep.subr.bf16.mxu0 %v2073_v41  ;;  %1829 = vmatprep.subr.bf16.mxu1 %v2075_v42 }
  0xb5   : > { %1766 = vmatpush3.bf16.msra.mxu0 %v2074_v47  ;;  %1830 = vmatpush3.bf16.msra.mxu1 %v2076_v48 }
  0xb6   : > { %1767 = vmatprep.subr.bf16.mxu0 %v2077_v49  ;;  %1831 = vmatprep.subr.bf16.mxu1 %v2079_v50 }
  0xb7   : > { %808 = vmatmul.mubr.bf16.gmra.mxu0 %v329_v51  ;;  %921 = vmatmul.mubr.bf16.gmra.mxu1 %v329_v51 }
  0xb8   : > { %817 = vmatprep.mubr.bf16.mxu0 %v332_v52  ;;  %930 = vmatprep.mubr.bf16.mxu1 %v332_v52 }
  0xb9   : > { %1768 = vmatpush3.bf16.msra.mxu0 %v2078_v53  ;;  %1832 = vmatpush3.bf16.msra.mxu1 %v2080_v11 }
  0xba   : > { %1769 = vmatprep.subr.bf16.mxu0 %v2081_v12  ;;  %1833 = vmatprep.subr.bf16.mxu1 %v2083_v13 }
  0xbd   : > { %1770 = vmatpush3.bf16.msra.mxu0 %v2082_v14  ;;  %1834 = vmatpush3.bf16.msra.mxu1 %v2084_v15 }
  0xbf   : > { %818 = vmatmul.mubr.bf16.gmra.mxu0 %v331_v58  ;;  %931 = vmatmul.mubr.bf16.gmra.mxu1 %v331_v58 }
  0xc0   : > { %827 = vmatprep.mubr.bf16.mxu0 %v334_v59  ;;  %940 = vmatprep.mubr.bf16.mxu1 %v334_v59 }
  0xc7   : > { %828 = vmatmul.mubr.bf16.gmra.mxu0 %v333_v0  ;;  %941 = vmatmul.mubr.bf16.gmra.mxu1 %v333_v0 }
  0xc8   : > { %837 = vmatprep.mubr.bf16.mxu0 %v336_v1  ;;  %950 = vmatprep.mubr.bf16.mxu1 %v336_v1 }
  0xcf   : > { %838 = vmatmul.mubr.bf16.gmra.mxu0 %v335_v6  ;;  %951 = vmatmul.mubr.bf16.gmra.mxu1 %v335_v6 }
  0xd0   : > { %847 = vmatprep.mubr.bf16.mxu0 %v338_v7  ;;  %960 = vmatprep.mubr.bf16.mxu1 %v338_v7 }
  0xd7   : > { %848 = vmatmul.mubr.bf16.gmra.mxu0 %v337_v10  ;;  %961 = vmatmul.mubr.bf16.gmra.mxu1 %v337_v10 }
 0x15f   : > { %v779_v23 = vpop.f32.mrf.mxu0  ;;  %v892_v24 = vpop.f32.mrf.mxu1 }
 0x160   : > { %v780_v37 = vadd.f32 %v779_v23, %v2451_v27  ;;  %v893_v38 = vadd.f32 %v892_v24, %v2453_v28 }
 0x161   : > { %v781_v29 = vpop.f32.mrf.mxu0  ;;  %v894_v30 = vpop.f32.mrf.mxu1 }
 0x162   : > { %v782_v33 = vadd.f32 %v781_v29, %v2447_v25  ;;  %v895_v34 = vadd.f32 %v894_v30, %v2449_v26  ;;  %v971_v51 = vmax.f32 %v780_v37, 0.0  ;;  %v973_v52 = vmax.f32 %v893_v38, 0.0 }
 0x163   : > { %v783_v31 = vpop.f32.mrf.mxu0  ;;  %v896_v32 = vpop.f32.mrf.mxu1 }
 0x164   : > { %v784_v35 = vadd.f32 %v783_v31, %v2451_v27  ;;  %v897_v36 = vadd.f32 %v896_v32, %v2453_v28  ;;  %v972_v47 = vmax.f32 %v782_v33, 0.0  ;;  %v974_v48 = vmax.f32 %v895_v34, 0.0 }
 0x165   : > { %v785_v39 = vpop.f32.mrf.mxu0  ;;  %v898_v40 = vpop.f32.mrf.mxu1 }
 0x166   : > { %v786_v41 = vadd.f32 %v785_v39, %v2447_v25  ;;  %v899_v42 = vadd.f32 %v898_v40, %v2449_v26  ;;  %v975_v43 = vmax.f32 %v784_v35, 0.0  ;;  %v977_v44 = vmax.f32 %v897_v36, 0.0 }
 0x167   : > { %v789_v45 = vpop.f32.mrf.mxu0  ;;  %v902_v46 = vpop.f32.mrf.mxu1 }
 0x168   : > { %v976_v49 = vmax.f32 %v786_v41, 0.0  ;;  %v978_v50 = vmax.f32 %v899_v42, 0.0  ;;  %v1035_v57 = vpack.c.bf16 %v975_v43, %v971_v51  ;;  %v1037_v58 = vpack.c.bf16 %v977_v44, %v973_v52 }
 0x169   : > { %v791_v53 = vpop.f32.mrf.mxu0  ;;  %v904_v54 = vpop.f32.mrf.mxu1  ;;  %v790_v1 = vadd.f32 %v789_v45, %v2451_v27  ;;  %v903_v2 = vadd.f32 %v902_v46, %v2453_v28 }
 0x16a   : > { %v1036_v55 = vpack.c.bf16 %v976_v49, %v972_v47  ;;  %v1038_v56 = vpack.c.bf16 %v978_v50, %v974_v48  ;;  %v792_v59 = vadd.f32 %v791_v53, %v2447_v25  ;;  %v905_v62 = vadd.f32 %v904_v54, %v2449_v26 }
 0x16b   : > { %v793_v60 = vpop.f32.mrf.mxu0  ;;  %v906_v61 = vpop.f32.mrf.mxu1  ;;  %v979_v15 = vmax.f32 %v790_v1, 0.0  ;;  %v981_v16 = vmax.f32 %v903_v2, 0.0 }
 0x16c   : > { %v794_v63 = vadd.f32 %v793_v60, %v2451_v27  ;;  %v907_v0 = vadd.f32 %v906_v61, %v2453_v28  ;;  %1362 = vmatprep.mubr.bf16.mxu0 %v1036_v55  ;;  %1459 = vmatprep.mubr.bf16.mxu1 %v1038_v56  ;;  %v980_v11 = vmax.f32 %v792_v59, 0.0  ;;  %v982_v12 = vmax.f32 %v905_v62, 0.0 }
 0x16d   : > { %v795_v3 = vpop.f32.mrf.mxu0  ;;  %v908_v4 = vpop.f32.mrf.mxu1  ;;  %1363 = vmatmul.mubr.bf16.vlgmr.msra.gmra.mxu0 %v1035_v57  ;;  %1460 = vmatmul.mubr.bf16.vlgmr.msra.gmra.mxu1 %v1037_v58 }
 0x16e   : > { %v796_v5 = vadd.f32 %v795_v3, %v2447_v25  ;;  %v909_v6 = vadd.f32 %v908_v4, %v2449_v26  ;;  %v983_v7 = vmax.f32 %v794_v63, 0.0  ;;  %v985_v8 = vmax.f32 %v907_v0, 0.0 }
 0x16f   : > { %v799_v9 = vpop.f32.mrf.mxu0  ;;  %v912_v10 = vpop.f32.mrf.mxu1 }
 0x170   : > { %v984_v13 = vmax.f32 %v796_v5, 0.0  ;;  %v986_v14 = vmax.f32 %v909_v6, 0.0  ;;  %v1039_v21 = vpack.c.bf16 %v983_v7, %v979_v15  ;;  %v1041_v22 = vpack.c.bf16 %v985_v8, %v981_v16 }
 0x171   : > { %v801_v17 = vpop.f32.mrf.mxu0  ;;  %v914_v18 = vpop.f32.mrf.mxu1  ;;  %v800_v33 = vadd.f32 %v799_v9, %v2451_v27  ;;  %v913_v34 = vadd.f32 %v912_v10, %v2453_v28 }
 0x172   : > { %v1040_v19 = vpack.c.bf16 %v984_v13, %v980_v11  ;;  %v1042_v20 = vpack.c.bf16 %v986_v14, %v982_v12  ;;  %v802_v23 = vadd.f32 %v801_v17, %v2447_v25  ;;  %v915_v30 = vadd.f32 %v914_v18, %v2449_v26 }
 0x173   : > { %v803_v24 = vpop.f32.mrf.mxu0  ;;  %v916_v29 = vpop.f32.mrf.mxu1  ;;  %v987_v47 = vmax.f32 %v800_v33, 0.0  ;;  %v989_v48 = vmax.f32 %v913_v34, 0.0 }
 0x174   : > { %v804_v31 = vadd.f32 %v803_v24, %v2451_v27  ;;  %v917_v32 = vadd.f32 %v916_v29, %v2453_v28  ;;  %1370 = vmatprep.mubr.bf16.mxu0 %v1040_v19  ;;  %1467 = vmatprep.mubr.bf16.mxu1 %v1042_v20  ;;  %v988_v43 = vmax.f32 %v802_v23, 0.0  ;;  %v990_v44 = vmax.f32 %v915_v30, 0.0 }
 0x175   : > { %v805_v35 = vpop.f32.mrf.mxu0  ;;  %v918_v36 = vpop.f32.mrf.mxu1  ;;  %1371 = vmatmul.mubr.bf16.gmra.mxu0 %v1039_v21  ;;  %1468 = vmatmul.mubr.bf16.gmra.mxu1 %v1041_v22 }
 0x176   : > { %v806_v37 = vadd.f32 %v805_v35, %v2447_v25  ;;  %v919_v38 = vadd.f32 %v918_v36, %v2449_v26  ;;  %v991_v39 = vmax.f32 %v804_v31, 0.0  ;;  %v993_v40 = vmax.f32 %v917_v32, 0.0 }
 0x177   : > { %v809_v41 = vpop.f32.mrf.mxu0  ;;  %v922_v42 = vpop.f32.mrf.mxu1 }
 0x178   : > { %v992_v45 = vmax.f32 %v806_v37, 0.0  ;;  %v994_v46 = vmax.f32 %v919_v38, 0.0  ;;  %v1043_v53 = vpack.c.bf16 %v991_v39, %v987_v47  ;;  %v1045_v54 = vpack.c.bf16 %v993_v40, %v989_v48 }
 0x179   : > { %v811_v49 = vpop.f32.mrf.mxu0  ;;  %v924_v50 = vpop.f32.mrf.mxu1  ;;  %v810_v61 = vadd.f32 %v809_v41, %v2451_v27  ;;  %v923_v62 = vadd.f32 %v922_v42, %v2453_v28 }
 0x17a   : > { %v1044_v51 = vpack.c.bf16 %v992_v45, %v988_v43  ;;  %v1046_v52 = vpack.c.bf16 %v994_v46, %v990_v44  ;;  %v812_v55 = vadd.f32 %v811_v49, %v2447_v25  ;;  %v925_v58 = vadd.f32 %v924_v50, %v2449_v26 }
 0x17b   : > { %v813_v56 = vpop.f32.mrf.mxu0  ;;  %v926_v57 = vpop.f32.mrf.mxu1  ;;  %v995_v11 = vmax.f32 %v810_v61, 0.0  ;;  %v997_v12 = vmax.f32 %v923_v62, 0.0 }
 0x17c   : > { %v814_v59 = vadd.f32 %v813_v56, %v2451_v27  ;;  %v927_v60 = vadd.f32 %v926_v57, %v2453_v28  ;;  %1378 = vmatprep.mubr.bf16.mxu0 %v1044_v51  ;;  %1475 = vmatprep.mubr.bf16.mxu1 %v1046_v52  ;;  %v996_v7 = vmax.f32 %v812_v55, 0.0  ;;  %v998_v8 = vmax.f32 %v925_v58, 0.0 }
 0x17d   : > { %v815_v63 = vpop.f32.mrf.mxu0  ;;  %v928_v0 = vpop.f32.mrf.mxu1  ;;  %1379 = vmatmul.mubr.bf16.gmra.mxu0 %v1043_v53  ;;  %1476 = vmatmul.mubr.bf16.gmra.mxu1 %v1045_v54 }
 0x17e   : > { %v816_v1 = vadd.f32 %v815_v63, %v2447_v25  ;;  %v929_v2 = vadd.f32 %v928_v0, %v2449_v26  ;;  %v999_v3 = vmax.f32 %v814_v59, 0.0  ;;  %v1001_v4 = vmax.f32 %v927_v60, 0.0 }
 0x17f   : > { %v819_v5 = vpop.f32.mrf.mxu0  ;;  %v932_v6 = vpop.f32.mrf.mxu1 }
 0x180   : > { %v1000_v9 = vmax.f32 %v816_v1, 0.0  ;;  %v1002_v10 = vmax.f32 %v929_v2, 0.0  ;;  %v1047_v17 = vpack.c.bf16 %v999_v3, %v995_v11  ;;  %v1049_v18 = vpack.c.bf16 %v1001_v4, %v997_v12 }
 0x181   : > { %v821_v13 = vpop.f32.mrf.mxu0  ;;  %v934_v14 = vpop.f32.mrf.mxu1  ;;  %v820_v29 = vadd.f32 %v819_v5, %v2451_v27  ;;  %v933_v30 = vadd.f32 %v932_v6, %v2453_v28 }
 0x182   : > { %v1048_v15 = vpack.c.bf16 %v1000_v9, %v996_v7  ;;  %v1050_v16 = vpack.c.bf16 %v1002_v10, %v998_v8  ;;  %v822_v19 = vadd.f32 %v821_v13, %v2447_v25  ;;  %v935_v22 = vadd.f32 %v934_v14, %v2449_v26 }
 0x183   : > { %v823_v20 = vpop.f32.mrf.mxu0  ;;  %v936_v21 = vpop.f32.mrf.mxu1  ;;  %v1003_v43 = vmax.f32 %v820_v29, 0.0  ;;  %v1005_v44 = vmax.f32 %v933_v30, 0.0 }
 0x184   : > { %v824_v23 = vadd.f32 %v823_v20, %v2451_v27  ;;  %v937_v24 = vadd.f32 %v936_v21, %v2453_v28  ;;  %1386 = vmatprep.mubr.bf16.mxu0 %v1048_v15  ;;  %1483 = vmatprep.mubr.bf16.mxu1 %v1050_v16  ;;  %v1004_v39 = vmax.f32 %v822_v19, 0.0  ;;  %v1006_v40 = vmax.f32 %v935_v22, 0.0 }
 0x185   : > { %v825_v31 = vpop.f32.mrf.mxu0  ;;  %v938_v32 = vpop.f32.mrf.mxu1  ;;  %1387 = vmatmul.mubr.bf16.gmra.mxu0 %v1047_v17  ;;  %1484 = vmatmul.mubr.bf16.gmra.mxu1 %v1049_v18 }
 0x186   : > { %v826_v33 = vadd.f32 %v825_v31, %v2447_v25  ;;  %v939_v34 = vadd.f32 %v938_v32, %v2449_v26  ;;  %v1007_v35 = vmax.f32 %v824_v23, 0.0  ;;  %v1009_v36 = vmax.f32 %v937_v24, 0.0 }
 0x187   : > { %v829_v37 = vpop.f32.mrf.mxu0  ;;  %v942_v38 = vpop.f32.mrf.mxu1 }
 0x188   : > { %v1008_v41 = vmax.f32 %v826_v33, 0.0  ;;  %v1010_v42 = vmax.f32 %v939_v34, 0.0  ;;  %v1051_v49 = vpack.c.bf16 %v1007_v35, %v1003_v43  ;;  %v1053_v50 = vpack.c.bf16 %v1009_v36, %v1005_v44 }
 0x189   : > { %v831_v45 = vpop.f32.mrf.mxu0  ;;  %v944_v46 = vpop.f32.mrf.mxu1  ;;  %v830_v57 = vadd.f32 %v829_v37, %v2451_v27  ;;  %v943_v58 = vadd.f32 %v942_v38, %v2453_v28 }
 0x18a   : > { %v1052_v47 = vpack.c.bf16 %v1008_v41, %v1004_v39  ;;  %v1054_v48 = vpack.c.bf16 %v1010_v42, %v1006_v40  ;;  %v832_v51 = vadd.f32 %v831_v45, %v2447_v25  ;;  %v945_v54 = vadd.f32 %v944_v46, %v2449_v26 }
 0x18b   : > { %v833_v52 = vpop.f32.mrf.mxu0  ;;  %v946_v53 = vpop.f32.mrf.mxu1  ;;  %v1011_v7 = vmax.f32 %v830_v57, 0.0  ;;  %v1013_v8 = vmax.f32 %v943_v58, 0.0 }
 0x18c   : > { %v834_v55 = vadd.f32 %v833_v52, %v2451_v27  ;;  %v947_v56 = vadd.f32 %v946_v53, %v2453_v28  ;;  %1394 = vmatprep.mubr.bf16.mxu0 %v1052_v47  ;;  %1491 = vmatprep.mubr.bf16.mxu1 %v1054_v48  ;;  %v1012_v3 = vmax.f32 %v832_v51, 0.0  ;;  %v1014_v4 = vmax.f32 %v945_v54, 0.0 }
 0x18d   : > { %v835_v59 = vpop.f32.mrf.mxu0  ;;  %v948_v60 = vpop.f32.mrf.mxu1  ;;  %1395 = vmatmul.mubr.bf16.gmra.mxu0 %v1051_v49  ;;  %1492 = vmatmul.mubr.bf16.gmra.mxu1 %v1053_v50 }
 0x18e   : > { %v836_v61 = vadd.f32 %v835_v59, %v2447_v25  ;;  %v949_v62 = vadd.f32 %v948_v60, %v2449_v26  ;;  %v1015_v63 = vmax.f32 %v834_v55, 0.0  ;;  %v1017_v0 = vmax.f32 %v947_v56, 0.0 }
 0x18f   : > { %v839_v1 = vpop.f32.mrf.mxu0  ;;  %v952_v2 = vpop.f32.mrf.mxu1 }
 0x190   : > { %v1016_v5 = vmax.f32 %v836_v61, 0.0  ;;  %v1018_v6 = vmax.f32 %v949_v62, 0.0  ;;  %v1055_v13 = vpack.c.bf16 %v1015_v63, %v1011_v7  ;;  %v1057_v14 = vpack.c.bf16 %v1017_v0, %v1013_v8 }
 0x191   : > { %v841_v9 = vpop.f32.mrf.mxu0  ;;  %v954_v10 = vpop.f32.mrf.mxu1  ;;  %v840_v21 = vadd.f32 %v839_v1, %v2451_v27  ;;  %v953_v22 = vadd.f32 %v952_v2, %v2453_v28 }
 0x192   : > { %v1056_v11 = vpack.c.bf16 %v1016_v5, %v1012_v3  ;;  %v1058_v12 = vpack.c.bf16 %v1018_v6, %v1014_v4  ;;  %v842_v15 = vadd.f32 %v841_v9, %v2447_v25  ;;  %v955_v18 = vadd.f32 %v954_v10, %v2449_v26  ;;  %v2524_v5 = vld [vmem:[%s2580_s4] ss:$0 sm:$0xff] }
 0x193   : > { %v843_v16 = vpop.f32.mrf.mxu0  ;;  %v956_v17 = vpop.f32.mrf.mxu1  ;;  %v1019_v39 = vmax.f32 %v840_v21, 0.0  ;;  %v1021_v40 = vmax.f32 %v953_v22, 0.0 }
 0x194   : > { %v844_v19 = vadd.f32 %v843_v16, %v2451_v27  ;;  %v957_v20 = vadd.f32 %v956_v17, %v2453_v28  ;;  %1402 = vmatprep.mubr.bf16.mxu0 %v1056_v11  ;;  %1499 = vmatprep.mubr.bf16.mxu1 %v1058_v12  ;;  %v1020_v35 = vmax.f32 %v842_v15, 0.0  ;;  %v1022_v36 = vmax.f32 %v955_v18, 0.0 }
 0x195   : > { %v845_v23 = vpop.f32.mrf.mxu0  ;;  %v958_v24 = vpop.f32.mrf.mxu1  ;;  %1403 = vmatmul.mubr.bf16.gmra.mxu0 %v1055_v13  ;;  %1500 = vmatmul.mubr.bf16.gmra.mxu1 %v1057_v14 }
 0x196   : > { %v846_v29 = vadd.f32 %v845_v23, %v2447_v25  ;;  %v959_v30 = vadd.f32 %v958_v24, %v2449_v26  ;;  %v1023_v31 = vmax.f32 %v844_v19, 0.0  ;;  %v1025_v32 = vmax.f32 %v957_v20, 0.0 }
 0x197   : > { %v849_v33 = vpop.f32.mrf.mxu0  ;;  %v962_v34 = vpop.f32.mrf.mxu1 }
 0x198   : > { %v1024_v37 = vmax.f32 %v846_v29, 0.0  ;;  %v1026_v38 = vmax.f32 %v959_v30, 0.0  ;;  %v1059_v45 = vpack.c.bf16 %v1023_v31, %v1019_v39  ;;  %v1061_v46 = vpack.c.bf16 %v1025_v32, %v1021_v40 }
 0x199   : > { %v851_v41 = vpop.f32.mrf.mxu0  ;;  %v964_v42 = vpop.f32.mrf.mxu1  ;;  %v850_v53 = vadd.f32 %v849_v33, %v2451_v27  ;;  %v963_v54 = vadd.f32 %v962_v34, %v2453_v28 }
 0x19a   : > { %v1060_v43 = vpack.c.bf16 %v1024_v37, %v1020_v35  ;;  %v1062_v44 = vpack.c.bf16 %v1026_v38, %v1022_v36  ;;  %v852_v47 = vadd.f32 %v851_v41, %v2447_v25  ;;  %v965_v50 = vadd.f32 %v964_v42, %v2449_v26 }
 0x19b   : > { %v853_v48 = vpop.f32.mrf.mxu0  ;;  %v966_v49 = vpop.f32.mrf.mxu1  ;;  %v1027_v1 = vmax.f32 %v850_v53, 0.0  ;;  %v1029_v2 = vmax.f32 %v963_v54, 0.0 }
 0x19c   : > { %v854_v51 = vadd.f32 %v853_v48, %v2451_v27  ;;  %v967_v52 = vadd.f32 %v966_v49, %v2453_v28  ;;  %1410 = vmatprep.mubr.bf16.mxu0 %v1060_v43  ;;  %1507 = vmatprep.mubr.bf16.mxu1 %v1062_v44  ;;  %v1028_v61 = vmax.f32 %v852_v47, 0.0  ;;  %v1030_v62 = vmax.f32 %v965_v50, 0.0 }
 0x19d   : > { %v855_v55 = vpop.f32.mrf.mxu0  ;;  %v968_v56 = vpop.f32.mrf.mxu1  ;;  %1411 = vmatmul.mubr.bf16.gmra.mxu0 %v1059_v45  ;;  %1508 = vmatmul.mubr.bf16.gmra.mxu1 %v1061_v46 }
 0x19e   : > { %v856_v57 = vadd.f32 %v855_v55, %v2447_v25  ;;  %v969_v58 = vadd.f32 %v968_v56, %v2449_v26  ;;  %v1031_v59 = vmax.f32 %v854_v51, 0.0  ;;  %v1033_v60 = vmax.f32 %v967_v52, 0.0 }
 0x1a0   : > { %v1032_v63 = vmax.f32 %v856_v57, 0.0  ;;  %v1034_v0 = vmax.f32 %v969_v58, 0.0  ;;  %v1063_v28 = vpack.c.bf16 %v1031_v59, %v1027_v1  ;;  %v1065_v4 = vpack.c.bf16 %v1033_v60, %v1029_v2 }
 0x1a2   : > { %v1064_v27 = vpack.c.bf16 %v1032_v63, %v1028_v61  ;;  %v1066_v3 = vpack.c.bf16 %v1034_v0, %v1030_v62 }
 0x1a4   : > { %1418 = vmatprep.mubr.bf16.mxu0 %v1064_v27  ;;  %1515 = vmatprep.mubr.bf16.mxu1 %v1066_v3 }
 0x1a5   : > { %1419 = vmatmul.mubr.bf16.gmra.mxu0 %v1063_v28  ;;  %1516 = vmatmul.mubr.bf16.gmra.mxu1 %v1065_v4 }
 0x22d   : > { %v1771_v25 = vpop.f32.mrf.mxu0  ;;  %v1835_v26 = vpop.f32.mrf.mxu1 }
 0x22f   : > { %v1772_v6 = vpop.f32.mrf.mxu0  ;;  %v1836_v7 = vpop.f32.mrf.mxu1 }
 0x230   : > { %v1773_v8 = vadd.f32 %v1772_v6, %v1771_v25  ;;  %v1837_v12 = vadd.f32 %v1836_v7, %v1835_v26 }
 0x231   : > { %v1774_v9 = vpop.f32.mrf.mxu0  ;;  %v1838_v10 = vpop.f32.mrf.mxu1 }
 0x232   : > { %v1365_v11 = vadd.f32 %v1773_v8, %v2524_v5 }
 0x233   : > { %v1775_v13 = vpop.f32.mrf.mxu0  ;;  %v1839_v14 = vpop.f32.mrf.mxu1 }
 0x234   : > { %v1462_v15 = vadd.f32 %v1837_v12, %v1365_v11  ;;  %v1776_v16 = vadd.f32 %v1775_v13, %v1774_v9  ;;  %v1840_v20 = vadd.f32 %v1839_v14, %v1838_v10 }
 0x235   : > { %v1777_v17 = vpop.f32.mrf.mxu0  ;;  %v1841_v18 = vpop.f32.mrf.mxu1 }
 0x236   : > { %1524 = vst [vmem:[%s2530_s10] sm:$0xff] %v1462_v15  ;;  %v1368_v19 = vadd.f32 %v1776_v16, %v2524_v5 }
 0x237   : > { %v1778_v21 = vpop.f32.mrf.mxu0  ;;  %v1842_v22 = vpop.f32.mrf.mxu1 }
 0x238   : > { %v1465_v23 = vadd.f32 %v1840_v20, %v1368_v19  ;;  %v1779_v24 = vadd.f32 %v1778_v21, %v1777_v17  ;;  %v1843_v32 = vadd.f32 %v1842_v22, %v1841_v18 }
 0x239   : > { %v1780_v29 = vpop.f32.mrf.mxu0  ;;  %v1844_v30 = vpop.f32.mrf.mxu1 }
 0x23a   : > { %1525 = vst [vmem:[%s2530_s10 + $0x8] sm:$0xff] %v1465_v23  ;;  %v1373_v31 = vadd.f32 %v1779_v24, %v2524_v5 }
 0x23b   : > { %v1781_v33 = vpop.f32.mrf.mxu0  ;;  %v1845_v34 = vpop.f32.mrf.mxu1 }
 0x23c   : > { %v1470_v35 = vadd.f32 %v1843_v32, %v1373_v31  ;;  %v1782_v36 = vadd.f32 %v1781_v33, %v1780_v29  ;;  %v1846_v40 = vadd.f32 %v1845_v34, %v1844_v30 }
 0x23d   : > { %v1783_v37 = vpop.f32.mrf.mxu0  ;;  %v1847_v38 = vpop.f32.mrf.mxu1 }
 0x23e   : > { %1526 = vst [vmem:[%s2530_s10 + $0x10] sm:$0xff] %v1470_v35  ;;  %v1376_v39 = vadd.f32 %v1782_v36, %v2524_v5 }
 0x23f   : > { %v1784_v41 = vpop.f32.mrf.mxu0  ;;  %v1848_v42 = vpop.f32.mrf.mxu1 }
 0x240   : > { %v1473_v43 = vadd.f32 %v1846_v40, %v1376_v39  ;;  %v1785_v44 = vadd.f32 %v1784_v41, %v1783_v37  ;;  %v1849_v48 = vadd.f32 %v1848_v42, %v1847_v38 }
 0x241   : > { %v1786_v45 = vpop.f32.mrf.mxu0  ;;  %v1850_v46 = vpop.f32.mrf.mxu1 }
 0x242   : > { %1527 = vst [vmem:[%s2530_s10 + $0x18] sm:$0xff] %v1473_v43  ;;  %v1381_v47 = vadd.f32 %v1785_v44, %v2524_v5 }
 0x243   : > { %v1787_v49 = vpop.f32.mrf.mxu0  ;;  %v1851_v50 = vpop.f32.mrf.mxu1 }
 0x244   : > { %v1478_v51 = vadd.f32 %v1849_v48, %v1381_v47  ;;  %v1788_v52 = vadd.f32 %v1787_v49, %v1786_v45  ;;  %v1852_v56 = vadd.f32 %v1851_v50, %v1850_v46 }
 0x245   : > { %v1789_v53 = vpop.f32.mrf.mxu0  ;;  %v1853_v54 = vpop.f32.mrf.mxu1 }
 0x246   : > { %1528 = vst [vmem:[%s2530_s10 + $0x20] sm:$0xff] %v1478_v51  ;;  %v1384_v55 = vadd.f32 %v1788_v52, %v2524_v5 }
 0x247   : > { %v1790_v57 = vpop.f32.mrf.mxu0  ;;  %v1854_v58 = vpop.f32.mrf.mxu1 }
 0x248   : > { %v1481_v59 = vadd.f32 %v1852_v56, %v1384_v55  ;;  %v1791_v60 = vadd.f32 %v1790_v57, %v1789_v53  ;;  %v1855_v0 = vadd.f32 %v1854_v58, %v1853_v54 }
 0x249   : > { %v1792_v61 = vpop.f32.mrf.mxu0  ;;  %v1856_v62 = vpop.f32.mrf.mxu1 }
 0x24a   : > { %1529 = vst [vmem:[%s2530_s10 + $0x28] sm:$0xff] %v1481_v59  ;;  %v1389_v63 = vadd.f32 %v1791_v60, %v2524_v5 }
 0x24b   : > { %v1793_v1 = vpop.f32.mrf.mxu0  ;;  %v1857_v2 = vpop.f32.mrf.mxu1 }
 0x24c   : > { %v1486_v27 = vadd.f32 %v1855_v0, %v1389_v63  ;;  %v1794_v3 = vadd.f32 %v1793_v1, %v1792_v61  ;;  %v1858_v26 = vadd.f32 %v1857_v2, %v1856_v62 }
 0x24d   : > { %v1795_v28 = vpop.f32.mrf.mxu0  ;;  %v1859_v4 = vpop.f32.mrf.mxu1 }
 0x24e   : > { %1530 = vst [vmem:[%s2530_s10 + $0x30] sm:$0xff] %v1486_v27  ;;  %v1392_v25 = vadd.f32 %v1794_v3, %v2524_v5 }
 0x24f   : > { %v1796_v6 = vpop.f32.mrf.mxu0  ;;  %v1860_v7 = vpop.f32.mrf.mxu1 }
 0x250   : > { %v1489_v8 = vadd.f32 %v1858_v26, %v1392_v25  ;;  %v1797_v9 = vadd.f32 %v1796_v6, %v1795_v28  ;;  %v1861_v13 = vadd.f32 %v1860_v7, %v1859_v4 }
 0x251   : > { %v1798_v10 = vpop.f32.mrf.mxu0  ;;  %v1862_v11 = vpop.f32.mrf.mxu1 }
 0x252   : > { %1531 = vst [vmem:[%s2530_s10 + $0x38] sm:$0xff] %v1489_v8  ;;  %v1397_v12 = vadd.f32 %v1797_v9, %v2524_v5 }
 0x253   : > { %v1799_v14 = vpop.f32.mrf.mxu0  ;;  %v1863_v15 = vpop.f32.mrf.mxu1 }
 0x254   : > { %v1494_v16 = vadd.f32 %v1861_v13, %v1397_v12  ;;  %v1800_v17 = vadd.f32 %v1799_v14, %v1798_v10  ;;  %v1864_v21 = vadd.f32 %v1863_v15, %v1862_v11 }
 0x255   : > { %v1801_v18 = vpop.f32.mrf.mxu0  ;;  %v1865_v19 = vpop.f32.mrf.mxu1 }
 0x256   : > { %1532 = vst [vmem:[%s2530_s10 + $0x40] sm:$0xff] %v1494_v16  ;;  %v1400_v20 = vadd.f32 %v1800_v17, %v2524_v5 }
 0x257   : > { %v1802_v22 = vpop.f32.mrf.mxu0  ;;  %v1866_v23 = vpop.f32.mrf.mxu1 }
 0x258   : > { %v1497_v24 = vadd.f32 %v1864_v21, %v1400_v20  ;;  %v1803_v29 = vadd.f32 %v1802_v22, %v1801_v18  ;;  %v1867_v33 = vadd.f32 %v1866_v23, %v1865_v19 }
 0x259   : > { %v1804_v30 = vpop.f32.mrf.mxu0  ;;  %v1868_v31 = vpop.f32.mrf.mxu1 }
 0x25a   : > { %1533 = vst [vmem:[%s2530_s10 + $0x48] sm:$0xff] %v1497_v24  ;;  %v1405_v32 = vadd.f32 %v1803_v29, %v2524_v5 }
 0x25b   : > { %v1805_v34 = vpop.f32.mrf.mxu0  ;;  %v1869_v35 = vpop.f32.mrf.mxu1 }
 0x25c   : > { %v1502_v36 = vadd.f32 %v1867_v33, %v1405_v32  ;;  %v1806_v37 = vadd.f32 %v1805_v34, %v1804_v30  ;;  %v1870_v41 = vadd.f32 %v1869_v35, %v1868_v31 }
 0x25d   : > { %v1807_v38 = vpop.f32.mrf.mxu0  ;;  %v1871_v39 = vpop.f32.mrf.mxu1 }
 0x25e   : > { %1534 = vst [vmem:[%s2530_s10 + $0x50] sm:$0xff] %v1502_v36  ;;  %v1408_v40 = vadd.f32 %v1806_v37, %v2524_v5 }
 0x25f   : > { %v1808_v42 = vpop.f32.mrf.mxu0  ;;  %v1872_v43 = vpop.f32.mrf.mxu1 }
 0x260   : > { %v1505_v44 = vadd.f32 %v1870_v41, %v1408_v40  ;;  %v1809_v45 = vadd.f32 %v1808_v42, %v1807_v38  ;;  %v1873_v49 = vadd.f32 %v1872_v43, %v1871_v39 }
 0x261   : > { %v1810_v46 = vpop.f32.mrf.mxu0  ;;  %v1874_v47 = vpop.f32.mrf.mxu1 }
 0x262   : > { %1535 = vst [vmem:[%s2530_s10 + $0x58] sm:$0xff] %v1505_v44  ;;  %v1413_v48 = vadd.f32 %v1809_v45, %v2524_v5 }
 0x263   : > { %v1811_v50 = vpop.f32.mrf.mxu0  ;;  %v1875_v51 = vpop.f32.mrf.mxu1 }
 0x264   : > { %v1510_v52 = vadd.f32 %v1873_v49, %v1413_v48  ;;  %v1812_v53 = vadd.f32 %v1811_v50, %v1810_v46  ;;  %v1876_v57 = vadd.f32 %v1875_v51, %v1874_v47 }
 0x265   : > { %v1813_v54 = vpop.f32.mrf.mxu0  ;;  %v1877_v55 = vpop.f32.mrf.mxu1 }
 0x266   : > { %1536 = vst [vmem:[%s2530_s10 + $0x60] sm:$0xff] %v1510_v52  ;;  %v1416_v56 = vadd.f32 %v1812_v53, %v2524_v5 }
 0x267   : > { %v1814_v58 = vpop.f32.mrf.mxu0  ;;  %v1878_v59 = vpop.f32.mrf.mxu1 }
 0x268   : > { %v1513_v60 = vadd.f32 %v1876_v57, %v1416_v56  ;;  %v1815_v61 = vadd.f32 %v1814_v58, %v1813_v54  ;;  %v1879_v1 = vadd.f32 %v1878_v59, %v1877_v55 }
 0x269   : > { %v1816_v62 = vpop.f32.mrf.mxu0  ;;  %v1880_v63 = vpop.f32.mrf.mxu1 }
 0x26a   : > { %1537 = vst [vmem:[%s2530_s10 + $0x68] sm:$0xff] %v1513_v60  ;;  %v1421_v0 = vadd.f32 %v1815_v61, %v2524_v5 }
 0x26b   : > { %v1817_v2 = vpop.f32.mrf.mxu0  ;;  %v1881_v27 = vpop.f32.mrf.mxu1 }
 0x26c   : > { %v1518_v3 = vadd.f32 %v1879_v1, %v1421_v0  ;;  %v1818_v28 = vadd.f32 %v1817_v2, %v1816_v62  ;;  %v1882_v25 = vadd.f32 %v1881_v27, %v1880_v63 }
 0x26e   : > { %1538 = vst [vmem:[%s2530_s10 + $0x70] sm:$0xff] %v1518_v3  ;;  %v1424_v4 = vadd.f32 %v1818_v28, %v2524_v5 }
 0x270   : > { %v1521_v26 = vadd.f32 %v1882_v25, %v1424_v4 }
 0x272   : > { %1539 = vst [vmem:[%s2530_s10 + $0x78] sm:$0xff] %v1521_v26 }
 0x273 PF: > { %p17_p3 = scmp.ge.s32.totalorder %s2349_s29, 4   ;;  %s2594_s18 = smov %s2225_s19 }
 0x274   : > { %s2595_s19 = smov %s2229_s20  ;;  %s2596_s20 = smov %s2359_s8 }
 0x275   : > { %s2597_s21 = smov %s2349_s29  ;;  %19 = sbr.rel (!%p17_p3) target bundleno = 5 (0x5), region = 92 }
 0x27a   :  { %1562 = vsyncpa [#allocation3], 1 }
 0x27b   :  { %1564 = vsyncpa [#allocation3 + $0x1], 1 }
 0x27c   :  { %1565 = vsyncpa [#allocation5], 1 }
 0x27d   :  { %1566 = vsyncpa [#allocation8], 1 }

</bundles_post_ra>
